<compile_context>
chip_gen: v5e
topology: v5e:2x2
jax: 0.10.0
libtpu: 0.0.40
codegen_flags: <defaults>
</compile_context>

<pallas_src>
import jax
import jax.numpy as jnp
from jax.experimental import pallas as pl
from jax.experimental.pallas import tpu as pltpu

EPS = 1e-07


def _round_up(x, m):
    return ((x + m - 1) // m) * m


def _listmle_kernel(y_true_ref, preds_ref, tri_ref, row_sum_ref):
    # (TB, Np) tiles; cast narrow input dtypes to f32 for the math.
    y_true = y_true_ref[...].astype(jnp.float32)
    preds = preds_ref[...].astype(jnp.float32)
    tri = tri_ref[...]                                   # (Np, Np) f32, 0/1

    mask = y_true == jnp.float32(-1.0)                   # sentinel / padding

    # Row max over unmasked entries only; floor it so fully-masked (padded)
    # rows never produce -inf - (-inf) = NaN downstream.
    preds_m = jnp.where(mask, jnp.float32(-jnp.inf), preds)
    max_vals = jnp.max(preds_m, axis=1, keepdims=True)   # (TB, 1)
    max_vals = jnp.maximum(max_vals, jnp.float32(-1e30))

    pm = jnp.where(mask, jnp.float32(0.0), preds - max_vals)       # (TB, Np)
    exp_pm = jnp.where(mask, jnp.float32(0.0), jnp.exp(pm))        # masked -> 0

    # Suffix (reverse) cumulative sum along N as one MXU matmul with the
    # precomputed lower-triangular ones matrix: cumsums[b, j] = sum_{k>=j} exp_pm[b, k]
    cumsums = jnp.dot(exp_pm, tri, preferred_element_type=jnp.float32)

    obs = jnp.where(mask, jnp.float32(0.0),
                    jnp.log(cumsums + jnp.float32(EPS)) - pm)

    # Per-row partial sums only; global reduction finishes in JAX.
    row_sum_ref[...] = jnp.sum(obs, axis=1, keepdims=True)          # (TB, 1)


def listmle_forward(teacher_top1_sim_pred, student_top1_sim_pred,
                    tau=0.05, gamma_=1.0, shuffle_key=None, block_b=None):
    """Exact semantics of ListMLE.forward (torch.randperm replaced by a
    deterministic jax.random permutation)."""
    del tau  # unused by ListMLE.forward (interface parity only)
    y_pred = student_top1_sim_pred
    y_true = teacher_top1_sim_pred
    b, n = y_pred.shape

    if shuffle_key is None:
        shuffle_key = jax.random.PRNGKey(1234)
    random_indices = jax.random.permutation(shuffle_key, n)
    y_pred_shuffled = y_pred[:, random_indices]
    y_true_shuffled = y_true[:, random_indices]

    # descending sort of teacher scores; gather student scores by same order
    indices = jnp.argsort(-y_true_shuffled, axis=-1)
    y_true_sorted = jnp.take_along_axis(y_true_shuffled, indices, axis=1)
    preds_sorted_by_true = jnp.take_along_axis(y_pred_shuffled, indices, axis=1)

    # ---- pad to TPU-friendly shapes (lane-dense N, sublane-aligned B) ----
    np_ = _round_up(max(n, 128), 128)
    if block_b is None:
        # >=128 rows per tile at realistic batch sizes (MXU occupancy);
        # otherwise just round the batch up to a sublane multiple.
        block_b = 128 if b >= 128 else _round_up(b, 8)
    tb = max(8, _round_up(block_b, 8))
    bp = _round_up(b, tb)
    num_tiles = bp // tb

    # Padded y_true entries get the -1 sentinel -> fully masked, contribute 0.
    # Padded preds values are irrelevant (masked before any use).
    y_true_p = jnp.full((bp, np_), -1.0, dtype=y_true_sorted.dtype)
    y_true_p = y_true_p.at[:b, :n].set(y_true_sorted)
    preds_p = jnp.zeros((bp, np_), dtype=preds_sorted_by_true.dtype)
    preds_p = preds_p.at[:b, :n].set(preds_sorted_by_true)

    # Hoisted lower-triangular ones matrix (T[k, j] = k >= j).
    tri = (jnp.arange(np_)[:, None] >= jnp.arange(np_)[None, :]).astype(jnp.float32)

    # VMEM budget: 2 inputs x 2 pipeline buffers x (TB, Np) + double-buffered
    # tri + output; clamp to a safe range (v5e scoped default is only 16 MiB).
    in_bytes = max(y_true_p.dtype.itemsize, preds_p.dtype.itemsize)
    vmem_est = 4 * tb * np_ * in_bytes + 2 * np_ * np_ * 4 + 4 * tb * 4
    vmem_limit = int(min(max(3 * vmem_est, 8 * 1024 * 1024), 64 * 1024 * 1024))

    row_sums = pl.pallas_call(
        _listmle_kernel,
        out_shape=jax.ShapeDtypeStruct((bp, 1), jnp.float32),
        grid_spec=pl.GridSpec(
            grid=(num_tiles,),
            in_specs=[
                pl.BlockSpec((tb, np_), lambda i: (i, 0)),     # y_true tile
                pl.BlockSpec((tb, np_), lambda i: (i, 0)),     # preds tile
                pl.BlockSpec((np_, np_), lambda i: (0, 0)),    # tri (resident)
            ],
            out_specs=pl.BlockSpec((tb, 1), lambda i: (i, 0)),
        ),
        compiler_params=pltpu.CompilerParams(
            dimension_semantics=("parallel",),
            vmem_limit_bytes=vmem_limit),
    )(y_true_p, preds_p, tri)

    # Padded rows contribute exactly 0, so sum over everything and divide by
    # the ORIGINAL batch size (mean over real rows).
    total = jnp.sum(row_sums)
    return gamma_ * total / jnp.float32(b)


def _listmle_reference(y_true_sorted, preds_sorted, gamma_, b):
    """Pure-JAX reference of the post-sort math (for a sanity check)."""
    del b
    mask = y_true_sorted == -1.0
    preds = jnp.where(mask, -jnp.inf, preds_sorted)
    max_vals = jnp.max(preds, axis=1, keepdims=True)
    pm = preds - max_vals
    cumsums = jnp.cumsum(jnp.exp(pm)[:, ::-1], axis=1)[:, ::-1]
    obs = jnp.log(cumsums + EPS) - pm
    obs = jnp.where(mask, 0.0, obs)
    return gamma_ * jnp.mean(jnp.sum(obs, axis=1))


if __name__ == "__main__":
    key = jax.random.PRNGKey(0)
    k_t, k_s, k_shuf = jax.random.split(key, 3)

    B, N = 16, 32   # (batch, ranking-list length)
    tau, gamma_ = 0.05, 1.0

    # synthetic "cosine similarity / tau" style predictions
    teacher = jax.random.uniform(k_t, (B, N), jnp.float32, -1.0, 1.0) / tau
    student = jax.random.uniform(k_s, (B, N), jnp.float32, -1.0, 1.0) / tau

    # block_b=8 -> Bp=16, grid=(2,) so the tiled/parallel batch path is exercised
    loss = listmle_forward(teacher, student, tau=tau, gamma_=gamma_,
                           shuffle_key=k_shuf, block_b=8)
    loss = jax.block_until_ready(loss)

    # sanity check against a pure-JAX reference on the same sorted inputs
    perm = jax.random.permutation(k_shuf, N)
    yp, yt = student[:, perm], teacher[:, perm]
    idx = jnp.argsort(-yt, axis=-1)
    ref = _listmle_reference(jnp.take_along_axis(yt, idx, axis=1),
                             jnp.take_along_axis(yp, idx, axis=1),
                             gamma_, B)
    assert jnp.allclose(loss, ref, rtol=1e-4, atol=1e-4), (loss, ref)

    print("KERNEL_OK")
</pallas_src>

<mosaic_0001>
module attributes {stable_mosaic.version = 11 : i64} {
  func.func @_listmle_kernel(%arg0: i32, %arg1: memref<8x128xf32, #tpu.memory_space<vmem>>, %arg2: memref<8x128xf32, #tpu.memory_space<vmem>>, %arg3: memref<128x128xf32, #tpu.memory_space<vmem>>, %arg4: memref<8x1xf32, #tpu.memory_space<vmem>>) attributes {dimension_semantics = [#tpu.dimension_semantics<parallel>], iteration_bounds = array<i64: 2>, scalar_prefetch = 0 : i64, scratch_operands = 0 : i64, tpu.core_type = #tpu.core_type<tc>, window_params = [{transform_indices = @transform_0, window_bounds = array<i64: 8, 128>}, {transform_indices = @transform_1, window_bounds = array<i64: 8, 128>}, {pipeline_mode = #tpu.pipeline_mode<synchronous>, transform_indices = @transform_2, window_bounds = array<i64: 128, 128>}, {transform_indices = @transform_3, window_bounds = array<i64: 8, 1>}]} {
    %c0 = arith.constant 0 : index
    %c0_0 = arith.constant 0 : index
    %0 = vector.load %arg1[%c0, %c0_0] : memref<8x128xf32, #tpu.memory_space<vmem>>, vector<8x128xf32>
    %c0_1 = arith.constant 0 : index
    %c0_2 = arith.constant 0 : index
    %1 = vector.load %arg2[%c0_1, %c0_2] : memref<8x128xf32, #tpu.memory_space<vmem>>, vector<8x128xf32>
    %c0_3 = arith.constant 0 : index
    %c0_4 = arith.constant 0 : index
    %2 = vector.load %arg3[%c0_3, %c0_4] : memref<128x128xf32, #tpu.memory_space<vmem>>, vector<128x128xf32>
    %cst = arith.constant -1.000000e+00 : f32
    %3 = vector.broadcast %cst : f32 to vector<8x128xf32>
    %4 = arith.cmpf oeq, %0, %3 : vector<8x128xf32>
    %cst_5 = arith.constant 0xFF800000 : f32
    %5 = vector.broadcast %cst_5 : f32 to vector<8x128xf32>
    %6 = arith.select %4, %5, %1 : vector<8x128xi1>, vector<8x128xf32>
    %cst_6 = arith.constant dense<0xFF800000> : vector<8xf32>
    %7 = vector.multi_reduction <maximumf>, %6, %cst_6 [1] : vector<8x128xf32> to vector<8xf32>
    %8 = vector.shape_cast %7 : vector<8xf32> to vector<8x1xf32>
    %cst_7 = arith.constant -1.000000e+30 : f32
    %9 = vector.broadcast %cst_7 : f32 to vector<8x1xf32>
    %10 = arith.maximumf %8, %9 : vector<8x1xf32>
    %11 = vector.broadcast %10 : vector<8x1xf32> to vector<8x128xf32>
    %12 = arith.subf %1, %11 : vector<8x128xf32>
    %cst_8 = arith.constant 0.000000e+00 : f32
    %13 = vector.broadcast %cst_8 : f32 to vector<8x128xf32>
    %14 = arith.select %4, %13, %12 : vector<8x128xi1>, vector<8x128xf32>
    %15 = math.exp %14 : vector<8x128xf32>
    %cst_9 = arith.constant 0.000000e+00 : f32
    %16 = vector.broadcast %cst_9 : f32 to vector<8x128xf32>
    %17 = arith.select %4, %16, %15 : vector<8x128xi1>, vector<8x128xf32>
    %cst_10 = arith.constant dense<0.000000e+00> : vector<8x128xf32>
    %18 = tpu.matmul %17, %2, %cst_10 {dimension_numbers = #tpu.dot_dimension_numbers<[1], [0], [0], [1], [0, 0, 1, 1], [], []>} : vector<8x128xf32>, vector<128x128xf32>, vector<8x128xf32> -> vector<8x128xf32>
    %cst_11 = arith.constant 1.000000e-07 : f32
    %19 = vector.broadcast %cst_11 : f32 to vector<8x128xf32>
    %20 = arith.addf %18, %19 : vector<8x128xf32>
    %21 = math.log %20 : vector<8x128xf32>
    %22 = arith.subf %21, %14 : vector<8x128xf32>
    %cst_12 = arith.constant 0.000000e+00 : f32
    %23 = vector.broadcast %cst_12 : f32 to vector<8x128xf32>
    %24 = arith.select %4, %23, %22 : vector<8x128xi1>, vector<8x128xf32>
    %cst_13 = arith.constant dense<0.000000e+00> : vector<8xf32>
    %25 = vector.multi_reduction <add>, %24, %cst_13 [1] : vector<8x128xf32> to vector<8xf32>
    %26 = vector.shape_cast %25 : vector<8xf32> to vector<8x1xf32>
    %c0_14 = arith.constant 0 : index
    %c0_15 = arith.constant 0 : index
    %27 = vector.load %arg4[%c0_14, %c0_15] : memref<8x1xf32, #tpu.memory_space<vmem>>, vector<8x1xf32>
    tpu.vector_store %arg4[%c0_14, %c0_15], %26 {strides = array<i32>} : memref<8x1xf32, #tpu.memory_space<vmem>>, vector<8x1xf32>,
    return
  }
  func.func @transform_0(%arg0: i32) -> (i32, i32) {
    %c0_i32 = arith.constant 0 : i32
    %c0_i32_0 = arith.constant 0 : i32
    return %arg0, %c0_i32 : i32, i32
  }
  func.func @transform_1(%arg0: i32) -> (i32, i32) {
    %c0_i32 = arith.constant 0 : i32
    %c0_i32_0 = arith.constant 0 : i32
    return %arg0, %c0_i32 : i32, i32
  }
  func.func @transform_2(%arg0: i32) -> (i32, i32) {
    %c0_i32 = arith.constant 0 : i32
    %c0_i32_0 = arith.constant 0 : i32
    %c0_i32_1 = arith.constant 0 : i32
    return %c0_i32, %c0_i32_0 : i32, i32
  }
  func.func @transform_3(%arg0: i32) -> (i32, i32) {
    %c0_i32 = arith.constant 0 : i32
    %c0_i32_0 = arith.constant 0 : i32
    return %arg0, %c0_i32 : i32, i32
  }
}

</mosaic_0001>

<bundles_post_ra>
// kernel: tpu_custom_call.1
= control target key start
LH: loop header
LB: loop body
LE: loop exit
PB: predicated region body
PF: predicated region fallthrough
CT: control target
= control target key end

     0   :  { %8 = vsyncpa [#allocation3], 0  ;;  %s765_s0 = inlined_call_operand.hbm [shape: f32[16,128], index: 0, kind: input, shape index: {}]   ;;  %s766_s1 = inlined_call_operand.hbm [shape: f32[16,128], index: 1, kind: input, shape index: {}]   ;;  %s767_s2 = inlined_call_operand.hbm [shape: f32[128,128], index: 2, kind: input, shape index: {}]   ;;  %s768_s3 = inlined_call_operand.vmem [shape: f32[16,1], index: 3, kind: output, shape index: {}]  }
   0x1   :  { %10 = vsyncpa [#allocation3 + $0x1], 0 }
   0x2   :  { %11 = vsyncpa [#allocation5], 0 }
   0x3   :  { %13 = vsyncpa [#allocation5 + $0x1], 0  ;;  %s631_s12 = smov 0   ;;  %s633_s13 = smov 0  }
   0x4   :  { %s635_s14 = smov 0   ;;  %s637_s15 = smov 0  }
   0x5 LB: > { %s134_s18 = sshll.u32 %s767_s2, 4  ;;  %s653_s19 = sadd.s32 4294967295, %s606_s15   ;;  %s606_s15 = sphi %s637_s15, %s775_s15   ;;  %s602_s14 = sphi %s635_s14, %s774_s14   ;;  %s598_s13 = sphi %s633_s13, %s773_s13   ;;  %s594_s12 = sphi %s631_s12, %s772_s12   ;;  %s135_s18 = int_to_ptr.hbm [resolvable:$true] %s134_s18 }
   0x6   : > { %p397_p0 = scmp.ge.s32.totalorder %s606_s15, 1  ;;  %p40_p1 = scmp.eq.s32.totalorder %s653_s19, 0 }
   0x7   : > { %p123_p2 = scmp.lt.s32.totalorder %s606_s15, 3  ;;  %s608_s21 = smov [#allocation6]  }
   0x8   : > { %s136_s22 = sshll.u32 %s608_s21, 4  ;;  %s609_s23 = smov 128   ;;  %s137_s22 = int_to_ptr.vmem [resolvable:$true] %s136_s22 }
   0x9   : > { %p658_p3 = pnand %p397_p0, %p123_p2  ;;  %s610_s24 = smov 8  }
   0xa   : > { %s667_s25 = sadd.s32 1, %s606_s15   ;;  %s26_s27 = sadd.s32 1, %s602_s14 }
   0xb   : > { %p421_p4 = pneg %p658_p3  ;;  %s23_s26 = ssub.s32 %s606_s15, %s667_s25 }
   0xc   : > { %p24_p6 = scmp.eq.s32.totalorder %s23_s26, 0  ;;  %p33_p7 = scmp.ne.s32.totalorder %s602_s14, %s598_s13 }
   0xd   : > { %p422_p5 = pnand %p421_p4, %p40_p1  ;;  %p34_p8 = scmp.eq.s32.totalorder %s606_s15, 0 }
   0xe   : > { %p39_p9 = scmp.ne.s32.totalorder %s598_s13, %s594_s12  ;;  %p433_p12 = scmp.lt.s32.totalorder %s606_s15, 2 }
   0xf   : > { %424 = dma.hbm_to_vmem [thread:$0]  (!%p422_p5), %s135_s18, 2048, %s137_s22, [#allocation5], %s609_s23, %s609_s23, %s610_s24  }
  0x10   : > { %s677_s28 = scalar_select %p24_p6, %s602_s14, %s26_s27  }
  0x11   : > { %p35_p10 = por %p34_p8, %p33_p7  ;;  %p681_p11 = por %p40_p1, %p39_p9 }
  0x12   : > { %s150_s30 = sand.u32 1, %s602_s14   ;;  %s401_s5 = sshll.u32 %s606_s15, 3 }
  0x13   : > { %s687_s4 = sshll.u32 %s150_s30, 3  ;;  %s158_s8 = scalar_lea.hbm %s765_s0, %s401_s5 }
  0x14   : > { %s154_s9 = scalar_lea.vmem [#allocation2], %s687_s4  ;;  %s160_s11 = sshll.u32 %s158_s8, 4  ;;  %s161_s11 = int_to_ptr.hbm [resolvable:$true] %s160_s11 }
  0x15   : > { %s162_s10 = sshll.u32 %s154_s9, 4  ;;  %p694_p13 = pnand %p433_p12, %p35_p10  ;;  %s163_s10 = int_to_ptr.vmem [resolvable:$true] %s162_s10 }
  0x16   : > { %s177_s18 = scalar_lea.hbm %s766_s1, %s401_s5  ;;  %s169_s21 = sand.u32 1, %s606_s15  }
  0x17   : > { %s151_s22 = scalar_lea.sflag [#allocation3], %s150_s30  ;;  %s504_s23 = sshra.s32 %s161_s11, 4  ;;  %s505_s23 = int_to_ptr.hbm [resolvable:$true] %s504_s23 }
  0x18   : > { %s506_s24 = scalar_lea.hbm %s505_s23, 8  ;;  %p508_p2 = pneg %p694_p13 }
  0x19   : > { %p507_p0 = scmp.ne.s32.totalorder %s505_s23, %s506_s24  ;;  %s511_s6 = scalar_lea.hbm %s765_s0, 16 }
  0x1a   : > { %p512_p6 = scmp.lt.s32.totalorder %s505_s23, %s765_s0  ;;  %p513_p7 = scmp.lt.s32.totalorder %s511_s6, %s506_s24 }
  0x1b   : > { %p509_p4 = pnand %p508_p2, %p507_p0 }
  0x1c   : > { %p514_p8 = por %p513_p7, %p512_p6 }
  0x1d   : > { %p510_p5 = pneg %p509_p4 }
  0x1f   : > { %p515_p9 = pnand %p514_p8, %p510_p5 }
  0x21   : > { %518 = shalt.err (!%p515_p9)
}
  0x22   : > { %428 = dma.hbm_to_vmem [thread:$0]  (!%p694_p13), %s161_s11, 128, %s163_s10, %s151_s22  }
  0x23   : > { %s179_s15 = sshll.u32 %s177_s18, 4  ;;  %s173_s30 = scalar_lea.vmem [#allocation4], %s687_s4  ;;  %s180_s15 = int_to_ptr.hbm [resolvable:$true] %s179_s15 }
  0x24   : > { %s181_s5 = sshll.u32 %s173_s30, 4  ;;  %s170_s9 = scalar_lea.sflag [#allocation5], %s169_s21  ;;  %s182_s5 = int_to_ptr.vmem [resolvable:$true] %s181_s5 }
  0x25   : > { %s534_s16 = sshra.s32 %s180_s15, 4  ;;  %s541_s26 = scalar_lea.hbm %s766_s1, 16  ;;  %s535_s16 = int_to_ptr.hbm [resolvable:$true] %s534_s16 }
  0x26   : > { %s536_s17 = scalar_lea.hbm %s535_s16, 8  ;;  %p542_p4 = scmp.lt.s32.totalorder %s535_s16, %s766_s1 }
  0x27   : > { %p537_p10 = scmp.ne.s32.totalorder %s535_s16, %s536_s17  ;;  %p543_p5 = scmp.lt.s32.totalorder %s541_s26, %s536_s17 }
  0x29   : > { %p539_p12 = pnand %p537_p10, %p508_p2  ;;  %p544_p6 = por %p543_p5, %p542_p4 }
  0x2b   : > { %p540_p0 = pneg %p539_p12 }
  0x2d   : > { %p545_p7 = pnand %p544_p6, %p540_p0 }
  0x2f   : > { %548 = shalt.err (!%p545_p7)
}
  0x30   : > { %431 = dma.hbm_to_vmem [thread:$0]  (!%p694_p13), %s180_s15, 128, %s182_s5, %s170_s9  }
  0x31   : > { %190 = sbr.rel (%p658_p3) target bundleno = 450 (0x1c2), region = 32  ;;  %s192_s4 = sand.u32 (!%p658_p3), 1, %s598_s13  }
  0x32   : > { %s405_s11 = sshll.u32 (!%p658_p3), %s192_s4, 3  ;;  %s193_s18 = scalar_lea.sflag (!%p658_p3), [#allocation3], %s192_s4 }
  0x33   : > { %s196_s21 = scalar_lea.vmem (!%p658_p3), [#allocation2], %s405_s11 }
  0x36   : > { %581 = dma.done.wait (%p681_p11), %s193_s18, 128  }
  0x37   : > { %583 = vsyncadd (%p681_p11), %s193_s18, 4294967168  ;;  %s202_s22 = sand.u32 1, %s653_s19   ;;  %s206_s12 = scalar_lea.vmem [#allocation4], %s405_s11 }
  0x38   : > { %s203_s6 = scalar_lea.sflag [#allocation5], %s202_s22 }
  0x39   : > { %585 = dma.done.wait (%p681_p11), %s203_s6, 128  }
  0x3a   : > { %587 = vsyncadd (%p681_p11), %s203_s6, 4294967168 }
  0x3b   : > { %589 = dma.done.wait (%p40_p1), [#allocation5], 2048  }
  0x3c   : > { %591 = vsyncadd (%p40_p1), [#allocation5], 4294965248  ;;  %v243_v0 = vld [vmem:[%s196_s21] sm:$0xff]  ;;  %v244_v1 = vld [vmem:[%s206_s12] sm:$0xff]  ;;  %p239_p1 = scmp.lt.s32.totalorder %s653_s19, 1  ;;  %vm297_vm2 = vcmask 7168  }
  0x3d   : > { %v260_v2 = vld [vmem:[#allocation6 + $0x78] sm:$0xff]  ;;  %vm261_vm0 = vcmp.eq.f32.partialorder %v243_v0, -1.0  ;;  %v259_v3 = vld [vmem:[#allocation6 + $0x70] sm:$0xff]  ;;  %v258_v5 = vld [vmem:[#allocation6 + $0x68] sm:$0xff] }
  0x3e   : > { %271 = vmatpush.msra.mxu0 %v260_v2  ;;  %v262_v4 = vsel %vm261_vm0, -inf, %v244_v1  ;;  %v257_v6 = vld [vmem:[#allocation6 + $0x60] sm:$0xff]  ;;  %v256_v7 = vld [vmem:[#allocation6 + $0x58] sm:$0xff]  ;;  %v255_v8 = vld [vmem:[#allocation6 + $0x50] sm:$0xff]  ;;  %s777_s19 = smov (!%p239_p1, %s653_s19), 1 }
  0x3f   : > { %263 = vmax.xlane.f32.xlu0 %v262_v4  ;;  %v254_v9 = vld [vmem:[#allocation6 + $0x48] sm:$0xff]  ;;  %v253_v10 = vld [vmem:[#allocation6 + $0x40] sm:$0xff]  ;;  %v252_v11 = vld [vmem:[#allocation6 + $0x38] sm:$0xff]  ;;  %s408_s20 = sshll.u32 %s777_s19, 3 }
  0x40   : > { %272 = vmatpush.msra.mxu0 %v259_v3  ;;  %v251_v12 = vld [vmem:[#allocation6 + $0x30] sm:$0xff]  ;;  %v250_v13 = vld [vmem:[#allocation6 + $0x28] sm:$0xff]  ;;  %v249_v14 = vld [vmem:[#allocation6 + $0x20] sm:$0xff]  ;;  %s242_s8 = scalar_lea.vmem %s768_s3, %s408_s20 }
  0x41   : > { %v248_v15 = vld [vmem:[#allocation6 + $0x18] sm:$0xff]  ;;  %v247_v16 = vld [vmem:[#allocation6 + $0x10] sm:$0xff]  ;;  %v246_v17 = vld [vmem:[#allocation6 + $0x8] sm:$0xff] }
  0x42   : > { %273 = vmatpush.msra.mxu0 %v258_v5  ;;  %v245_v18 = vld [vmem:[#allocation6] sm:$0xff]  ;;  %vm409_vm1 = vmneg %vm261_vm0 }
  0x44   : > { %274 = vmatpush.msra.mxu0 %v257_v6 }
  0x46   : > { %275 = vmatpush.msra.mxu0 %v256_v7 }
  0x48   : > { %276 = vmatpush.msra.mxu0 %v255_v8 }
  0x4a   : > { %277 = vmatpush.msra.mxu0 %v254_v9 }
  0x4c   : > { %278 = vmatpush.msra.mxu0 %v253_v10 }
  0x4e   : > { %279 = vmatpush.msra.mxu0 %v252_v11 }
  0x50   : > { %280 = vmatpush.msra.mxu0 %v251_v12 }
  0x52   : > { %281 = vmatpush.msra.mxu0 %v250_v13 }
  0x54   : > { %282 = vmatpush.msra.mxu0 %v249_v14 }
  0x56   : > { %283 = vmatpush.msra.mxu0 %v248_v15 }
  0x58   : > { %284 = vmatpush.msra.mxu0 %v247_v16 }
  0x5a   : > { %285 = vmatpush.msra.mxu0 %v246_v17 }
  0x5c   : > { %286 = vmatpush.msra.mxu0 %v245_v18 }
  0xb2   : > { %v264_v19 = vpop.xlane.xlu0 %263 }
  0xb3   : > { %v265_v20 = vmax.f32 %v264_v19, -1e+30 }
  0xb5   : > { %v266_v21 = vsub.f32 %v244_v1, %v265_v20 }
  0xb7   : > { %v267_v22 = vsel %vm261_vm0, 0.0, %v266_v21 }
  0xb8   : > { %v268_v23 = vmul.f32 1.442695, %v267_v22 }
  0xba   : > { %470 = vpow2.f32 %v268_v23 }
  0xc0   : > { %v471_v24 = vpop.eup %470 }
  0xc1   : > { %410 = vmatmul.msk.f32.vlgmr.msra.gmra.mxu0 %vm409_vm1, %v471_v24 }
 0x13e   : > { %v288_v25 = vpop.f32.mrf.mxu0 }
 0x13f   : > { %v289_v26 = vadd.f32 1e-07, %v288_v25 }
 0x141   : > { %472 = vlog2.f32 %v289_v26 }
 0x147   : > { %v473_v27 = vpop.eup %472 }
 0x148   : > { %v292_v28 = vmul.f32 0.6931472, %v473_v27 }
 0x14a   : > { %v293_v29 = vsub.f32 %v292_v28, %v267_v22 }
 0x14c   : > { %v294_v30 = vsel %vm261_vm0, 0.0, %v293_v29 }
 0x14d   : > { %295 = vadd.xlane.f32.xlu0 %v294_v30 }
 0x1c0   : > { %v296_v31 = vpop.xlane.xlu0 %295 }
 0x1c1   : > { %298 = vst.msk [vmem:[%s242_s8] sm:$0xff] %vm297_vm2, %v296_v31 }
 0x1c2 PF: > { %p16_p3 = scmp.ge.s32.totalorder %s667_s25, 4   ;;  %s772_s12 = smov %s598_s13 }
 0x1c3   : > { %s773_s13 = smov %s602_s14  ;;  %s774_s14 = smov %s677_s28 }
 0x1c4   : > { %s775_s15 = smov %s667_s25  ;;  %18 = sbr.rel (!%p16_p3) target bundleno = 5 (0x5), region = 89 }
 0x1c9   :  { %318 = vsyncpa [#allocation3], 1 }
 0x1ca   :  { %320 = vsyncpa [#allocation3 + $0x1], 1 }
 0x1cb   :  { %321 = vsyncpa [#allocation5], 1 }
 0x1cc   :  { %323 = vsyncpa [#allocation5 + $0x1], 1 }

</bundles_post_ra>
